<compile_context>
chip_gen: v7x
topology: tpu7x:2x2x1
jax: 0.10.0
libtpu: 0.0.40
codegen_flags: <defaults>
</compile_context>

<pallas_src>
import numpy as np
import jax
import jax.numpy as jnp
from jax.experimental import pallas as pl
from jax.experimental.pallas import tpu as pltpu

POOL_SIZES = (1, 2, 3, 6)
BN_EPS = 1e-5
COMPUTE_DTYPE = jnp.bfloat16   # MXU operand dtype; accumulation stays f32
NEG_BIG = -1e30                # folded "mask": relu(x + NEG_BIG) == 0 exactly


# ---------------------------------------------------------------------------
# Trace-time numpy constants: pooling / bilinear upsample as linear operators
# ---------------------------------------------------------------------------
def adaptive_pool_matrix(H, W, s):
    """(s*s, H*W) matrix implementing nn.AdaptiveAvgPool2d(s) on a flattened HxW grid."""
    P = np.zeros((s * s, H * W), np.float32)
    for a in range(s):
        h0, h1 = (a * H) // s, -((-(a + 1) * H) // s)      # floor, ceil (PyTorch bins)
        for b in range(s):
            w0, w1 = (b * W) // s, -((-(b + 1) * W) // s)
            inv = 1.0 / ((h1 - h0) * (w1 - w0))
            for h in range(h0, h1):
                for w in range(w0, w1):
                    P[a * s + b, h * W + w] = inv
    return P


def upsample_1d_matrix(out_size, in_size):
    """(out, in) 1D linear-interp matrix, F.interpolate(..., align_corners=True)."""
    U = np.zeros((out_size, in_size), np.float32)
    if in_size == 1:
        U[:, 0] = 1.0
        return U
    for i in range(out_size):
        sc = i * (in_size - 1) / (out_size - 1)
        a0 = min(int(np.floor(sc)), in_size - 1)
        frac = sc - a0
        U[i, a0] += 1.0 - frac
        if a0 + 1 < in_size:
            U[i, a0 + 1] += frac
    return U


def upsample_matrix(H, W, s):
    """(H*W, s*s): bilinear align_corners=True from (s,s) to (H,W)."""
    return np.kron(upsample_1d_matrix(H, s), upsample_1d_matrix(W, s)).astype(np.float32)


# ---------------------------------------------------------------------------
# Pallas kernel: one grid step == one batch element, 5 matmuls, fully fused
# ---------------------------------------------------------------------------
def pyramid_kernel(x_ref, pt_ref, mt_ref, wc_ref, bc_ref,
                   wox_ref, wob_ref, bo_ref, o_ref):
    xf = x_ref[0]                                                     # (C, HW) bf16

    # 1) all 4 adaptive average-pools at once (pool == matmul)        -> (C, S)
    pooled = jnp.dot(xf, pt_ref[...], preferred_element_type=jnp.float32)

    # 2) all 4 branch 1x1 conv+BN+ReLU at once; cross-branch blocks are
    #    eliminated exactly by the -1e30 bias entries (ReLU -> 0)     -> (4*Ci, S)
    z = jnp.dot(wc_ref[...], pooled.astype(wc_ref.dtype),
                preferred_element_type=jnp.float32)
    z = jnp.maximum(z + bc_ref[...], 0.0)                             # f32 elementwise

    # 3) output-conv branch weights applied while still pooled        -> (OUT, S)
    t = jnp.dot(wob_ref[...], z.astype(wob_ref.dtype),
                preferred_element_type=jnp.float32)

    # 4) bilinear (align_corners=True) upsample + sum over branches   -> (OUT, HW)
    branch = jnp.dot(t.astype(mt_ref.dtype), mt_ref[...],
                     preferred_element_type=jnp.float32)

    # 5) identity (concat) part of the output conv                    -> (OUT, HW)
    ident = jnp.dot(wox_ref[...], xf, preferred_element_type=jnp.float32)

    out = jnp.maximum(ident + branch + bo_ref[...], 0.0)              # f32 elementwise
    o_ref[0] = out.astype(o_ref.dtype)                                # lane-dense store


def pyramid_pooling(x_nchw, pt, mt, wc, bc, wox, wob, bo):
    N, C, H, W = x_nchw.shape
    HW = H * W
    OUT = wox.shape[0]
    S_PAD = pt.shape[1]
    CI4 = wc.shape[0]

    xf = x_nchw.reshape(N, C, HW).astype(COMPUTE_DTYPE)   # pre-flatten outside the kernel
    side = (pt, mt, wc, bc, wox, wob, bo)

    def full_spec(a):
        r = a.ndim
        return pl.BlockSpec(a.shape, lambda n, _r=r: (0,) * _r)

    flops = 2 * N * (C * HW * S_PAD + CI4 * C * S_PAD + OUT * CI4 * S_PAD
                     + OUT * S_PAD * HW + OUT * C * HW)
    bytes_accessed = (xf.size * xf.dtype.itemsize + N * OUT * HW * 4
                      + sum(a.size * a.dtype.itemsize for a in side))

    out = pl.pallas_call(
        pyramid_kernel,
        out_shape=jax.ShapeDtypeStruct((N, OUT, HW), jnp.float32),
        grid=(N,),
        in_specs=[pl.BlockSpec((1, C, HW), lambda n: (n, 0, 0))]
                 + [full_spec(a) for a in side],
        out_specs=pl.BlockSpec((1, OUT, HW), lambda n: (n, 0, 0)),
        compiler_params=pltpu.CompilerParams(dimension_semantics=("parallel",)),
        cost_estimate=pl.CostEstimate(flops=flops, transcendentals=0,
                                      bytes_accessed=bytes_accessed),
    )(xf, *side)
    return out.reshape(N, OUT, H, W)


# ---------------------------------------------------------------------------
# Deterministic parameters (Conv2d 1x1 bias=False + BatchNorm folded, eval mode)
# ---------------------------------------------------------------------------
def make_convbn_params(key, cin, cout):
    k1, k2, k3, k4, k5 = jax.random.split(key, 5)
    w = 0.1 * jax.random.normal(k1, (cout, cin), jnp.float32)
    gamma = 1.0 + 0.1 * jax.random.normal(k2, (cout,), jnp.float32)
    beta = 0.1 * jax.random.normal(k3, (cout,), jnp.float32)
    rmean = 0.1 * jax.random.normal(k4, (cout,), jnp.float32)
    rvar = 0.9 + 0.1 * jnp.abs(jax.random.normal(k5, (cout,), jnp.float32))
    scale = gamma / jnp.sqrt(rvar + BN_EPS)
    w_eff = w * scale[:, None]            # (cout, cin)
    b_eff = beta - rmean * scale          # (cout,)
    return w_eff, b_eff


def build_fused_operands(H, W, branch_w, branch_b, w_out, b_out):
    """Stack the 4 pyramid branches into the operands of the 5-matmul fused kernel."""
    Ci, C = branch_w[0].shape
    S = sum(s * s for s in POOL_SIZES)          # 50
    S_PAD = ((S + 7) // 8) * 8                  # 56 (sublane aligned)

    P = np.zeros((S_PAD, H * W), np.float32)                   # stacked pooling operator
    Mt = np.zeros((S_PAD, H * W), np.float32)                  # stacked upsample operator (T)
    bc = np.full((4 * Ci, S_PAD), NEG_BIG, np.float32)         # per-block bias / mask folded
    off = 0
    for j, s in enumerate(POOL_SIZES):
        P[off:off + s * s] = adaptive_pool_matrix(H, W, s)
        Mt[off:off + s * s] = upsample_matrix(H, W, s).T
        bc[j * Ci:(j + 1) * Ci, off:off + s * s] = np.asarray(branch_b[j])[:, None]
        off += s * s

    pt = jnp.asarray(P.T, COMPUTE_DTYPE)                              # (HW, S_PAD)
    mt = jnp.asarray(Mt, COMPUTE_DTYPE)                               # (S_PAD, HW)
    wc = jnp.concatenate(branch_w, axis=0).astype(COMPUTE_DTYPE)      # (4Ci, C)
    bc = jnp.asarray(bc)                                              # (4Ci, S_PAD) f32
    wox = w_out[:, :C].astype(COMPUTE_DTYPE)                          # (OUT, C)   aligned split
    wob = w_out[:, C:].astype(COMPUTE_DTYPE)                          # (OUT, 4Ci) aligned split
    bo = b_out[:, None]                                               # (OUT, 1)   f32
    return pt, mt, wc, bc, wox, wob, bo


# ---------------------------------------------------------------------------
# Plain-JAX f32 reference (unfused, per-branch) for a semantics check
# ---------------------------------------------------------------------------
def reference(x, branch_w, branch_b, w_out, b_out):
    N, C, H, W = x.shape
    xf = x.reshape(N, C, H * W)
    feats = [xf]
    for j, s in enumerate(POOL_SIZES):
        P = jnp.asarray(adaptive_pool_matrix(H, W, s))         # (s^2, HW)
        M = jnp.asarray(upsample_matrix(H, W, s))              # (HW, s^2)
        pooled = jnp.einsum('sp,ncp->ncs', P, xf)
        z = jax.nn.relu(jnp.einsum('ic,ncs->nis', branch_w[j], pooled)
                        + branch_b[j][None, :, None])
        feats.append(jnp.einsum('ps,nis->nip', M, z))
    cat = jnp.concatenate(feats, axis=1)                       # (N, 2C, HW)
    out = jax.nn.relu(jnp.einsum('oc,ncp->nop', w_out, cat) + b_out[None, :, None])
    return out.reshape(N, -1, H, W)


if __name__ == "__main__":
    N, H, W = 2, 16, 16
    C_IN = 16                      # in_channels
    C_INTER = C_IN // 4            # inter_channels = in_channels / 4
    C_OUT = 8                      # out_channels

    key = jax.random.PRNGKey(0)
    kx, k1, k2, k3, k4, ko = jax.random.split(key, 6)

    # input in PyTorch-native NCHW layout
    x = jax.random.normal(kx, (N, C_IN, H, W), jnp.float32)

    # branch conv-BN params (conv1..conv4) and output conv-BN params, folded (eval mode)
    branch = [make_convbn_params(k, C_IN, C_INTER) for k in (k1, k2, k3, k4)]
    branch_w = [p[0] for p in branch]                    # each (Ci, C)
    branch_b = [p[1] for p in branch]                    # each (Ci,)
    w_out, b_out = make_convbn_params(ko, 2 * C_IN, C_OUT)   # (OUT, 2C), (OUT,)

    pt, mt, wc, bc, wox, wob, bo = build_fused_operands(H, W, branch_w, branch_b,
                                                        w_out, b_out)

    run = jax.jit(pyramid_pooling)
    out = jax.block_until_ready(run(x, pt, mt, wc, bc, wox, wob, bo))

    ref = jax.block_until_ready(reference(x, branch_w, branch_b, w_out, b_out))
    assert out.shape == (N, C_OUT, H, W), out.shape
    # bf16 MXU operands vs f32 reference -> loose-ish tolerance
    np.testing.assert_allclose(np.asarray(out), np.asarray(ref), rtol=2e-2, atol=2e-2)

    print("KERNEL_OK")
</pallas_src>

<mosaic_0001>
module attributes {stable_mosaic.version = 11 : i64} {
  func.func @pyramid_kernel(%arg0: i32, %arg1: memref<1x16x256xbf16, #tpu.memory_space<vmem>>, %arg2: memref<256x56xbf16, #tpu.memory_space<vmem>>, %arg3: memref<56x256xbf16, #tpu.memory_space<vmem>>, %arg4: memref<16x16xbf16, #tpu.memory_space<vmem>>, %arg5: memref<16x56xf32, #tpu.memory_space<vmem>>, %arg6: memref<8x16xbf16, #tpu.memory_space<vmem>>, %arg7: memref<8x16xbf16, #tpu.memory_space<vmem>>, %arg8: memref<8x1xf32, #tpu.memory_space<vmem>>, %arg9: memref<1x8x256xf32, #tpu.memory_space<vmem>>) attributes {dimension_semantics = [#tpu.dimension_semantics<parallel>], iteration_bounds = array<i64: 2>, scalar_prefetch = 0 : i64, scratch_operands = 0 : i64, tpu.core_type = #tpu.core_type<tc>, window_params = [{transform_indices = @transform_0, window_bounds = array<i64: 1, 16, 256>}, {pipeline_mode = #tpu.pipeline_mode<synchronous>, transform_indices = @transform_1, window_bounds = array<i64: 256, 56>}, {pipeline_mode = #tpu.pipeline_mode<synchronous>, transform_indices = @transform_2, window_bounds = array<i64: 56, 256>}, {pipeline_mode = #tpu.pipeline_mode<synchronous>, transform_indices = @transform_3, window_bounds = array<i64: 16, 16>}, {pipeline_mode = #tpu.pipeline_mode<synchronous>, transform_indices = @transform_4, window_bounds = array<i64: 16, 56>}, {pipeline_mode = #tpu.pipeline_mode<synchronous>, transform_indices = @transform_5, window_bounds = array<i64: 8, 16>}, {pipeline_mode = #tpu.pipeline_mode<synchronous>, transform_indices = @transform_6, window_bounds = array<i64: 8, 16>}, {pipeline_mode = #tpu.pipeline_mode<synchronous>, transform_indices = @transform_7, window_bounds = array<i64: 8, 1>}, {transform_indices = @transform_8, window_bounds = array<i64: 1, 8, 256>}]} {
    %c0 = arith.constant 0 : index
    %c0_0 = arith.constant 0 : index
    %c0_1 = arith.constant 0 : index
    %0 = vector.load %arg1[%c0, %c0_0, %c0_1] : memref<1x16x256xbf16, #tpu.memory_space<vmem>>, vector<1x16x256xbf16>
    %1 = vector.shape_cast %0 : vector<1x16x256xbf16> to vector<16x256xbf16>
    %c0_2 = arith.constant 0 : index
    %c0_3 = arith.constant 0 : index
    %2 = vector.load %arg2[%c0_2, %c0_3] : memref<256x56xbf16, #tpu.memory_space<vmem>>, vector<256x56xbf16>
    %cst = arith.constant dense<0.000000e+00> : vector<16x56xf32>
    %3 = tpu.matmul %1, %2, %cst {dimension_numbers = #tpu.dot_dimension_numbers<[1], [0], [0], [1], [0, 0, 1, 1], [], []>} : vector<16x256xbf16>, vector<256x56xbf16>, vector<16x56xf32> -> vector<16x56xf32>
    %c0_4 = arith.constant 0 : index
    %c0_5 = arith.constant 0 : index
    %4 = vector.load %arg4[%c0_4, %c0_5] : memref<16x16xbf16, #tpu.memory_space<vmem>>, vector<16x16xbf16>
    %5 = arith.truncf %3 : vector<16x56xf32> to vector<16x56xbf16>
    %cst_6 = arith.constant dense<0.000000e+00> : vector<16x56xf32>
    %6 = tpu.matmul %4, %5, %cst_6 {dimension_numbers = #tpu.dot_dimension_numbers<[1], [0], [0], [1], [0, 0, 1, 1], [], []>} : vector<16x16xbf16>, vector<16x56xbf16>, vector<16x56xf32> -> vector<16x56xf32>
    %c0_7 = arith.constant 0 : index
    %c0_8 = arith.constant 0 : index
    %7 = vector.load %arg5[%c0_7, %c0_8] : memref<16x56xf32, #tpu.memory_space<vmem>>, vector<16x56xf32>
    %8 = arith.addf %6, %7 : vector<16x56xf32>
    %cst_9 = arith.constant 0.000000e+00 : f32
    %9 = vector.broadcast %cst_9 : f32 to vector<16x56xf32>
    %10 = arith.maximumf %8, %9 : vector<16x56xf32>
    %c0_10 = arith.constant 0 : index
    %c0_11 = arith.constant 0 : index
    %11 = vector.load %arg7[%c0_10, %c0_11] : memref<8x16xbf16, #tpu.memory_space<vmem>>, vector<8x16xbf16>
    %12 = arith.truncf %10 : vector<16x56xf32> to vector<16x56xbf16>
    %cst_12 = arith.constant dense<0.000000e+00> : vector<8x56xf32>
    %13 = tpu.matmul %11, %12, %cst_12 {dimension_numbers = #tpu.dot_dimension_numbers<[1], [0], [0], [1], [0, 0, 1, 1], [], []>} : vector<8x16xbf16>, vector<16x56xbf16>, vector<8x56xf32> -> vector<8x56xf32>
    %14 = arith.truncf %13 : vector<8x56xf32> to vector<8x56xbf16>
    %c0_13 = arith.constant 0 : index
    %c0_14 = arith.constant 0 : index
    %15 = vector.load %arg3[%c0_13, %c0_14] : memref<56x256xbf16, #tpu.memory_space<vmem>>, vector<56x256xbf16>
    %cst_15 = arith.constant dense<0.000000e+00> : vector<8x256xf32>
    %16 = tpu.matmul %14, %15, %cst_15 {dimension_numbers = #tpu.dot_dimension_numbers<[1], [0], [0], [1], [0, 0, 1, 1], [], []>} : vector<8x56xbf16>, vector<56x256xbf16>, vector<8x256xf32> -> vector<8x256xf32>
    %c0_16 = arith.constant 0 : index
    %c0_17 = arith.constant 0 : index
    %17 = vector.load %arg6[%c0_16, %c0_17] : memref<8x16xbf16, #tpu.memory_space<vmem>>, vector<8x16xbf16>
    %cst_18 = arith.constant dense<0.000000e+00> : vector<8x256xf32>
    %18 = tpu.matmul %17, %1, %cst_18 {dimension_numbers = #tpu.dot_dimension_numbers<[1], [0], [0], [1], [0, 0, 1, 1], [], []>} : vector<8x16xbf16>, vector<16x256xbf16>, vector<8x256xf32> -> vector<8x256xf32>
    %19 = arith.addf %18, %16 : vector<8x256xf32>
    %c0_19 = arith.constant 0 : index
    %c0_20 = arith.constant 0 : index
    %20 = vector.load %arg8[%c0_19, %c0_20] : memref<8x1xf32, #tpu.memory_space<vmem>>, vector<8x1xf32>
    %21 = vector.broadcast %20 : vector<8x1xf32> to vector<8x256xf32>
    %22 = arith.addf %19, %21 : vector<8x256xf32>
    %cst_21 = arith.constant 0.000000e+00 : f32
    %23 = vector.broadcast %cst_21 : f32 to vector<8x256xf32>
    %24 = arith.maximumf %22, %23 : vector<8x256xf32>
    %c0_22 = arith.constant 0 : index
    %c0_23 = arith.constant 0 : index
    %c0_24 = arith.constant 0 : index
    %25 = vector.load %arg9[%c0_22, %c0_23, %c0_24] : memref<1x8x256xf32, #tpu.memory_space<vmem>>, vector<1x8x256xf32>
    %26 = vector.shape_cast %25 : vector<1x8x256xf32> to vector<8x256xf32>
    %27 = vector.shape_cast %24 : vector<8x256xf32> to vector<1x8x256xf32>
    tpu.vector_store %arg9[%c0_22, %c0_23, %c0_24], %27 {strides = array<i32>} : memref<1x8x256xf32, #tpu.memory_space<vmem>>, vector<1x8x256xf32>,
    return
  }
  func.func @transform_0(%arg0: i32) -> (i32, i32, i32) {
    %c0_i32 = arith.constant 0 : i32
    %c0_i32_0 = arith.constant 0 : i32
    %c0_i32_1 = arith.constant 0 : i32
    return %arg0, %c0_i32, %c0_i32_0 : i32, i32, i32
  }
  func.func @transform_1(%arg0: i32) -> (i32, i32) {
    %c0_i32 = arith.constant 0 : i32
    %c0_i32_0 = arith.constant 0 : i32
    %c0_i32_1 = arith.constant 0 : i32
    return %c0_i32, %c0_i32_0 : i32, i32
  }
  func.func @transform_2(%arg0: i32) -> (i32, i32) {
    %c0_i32 = arith.constant 0 : i32
    %c0_i32_0 = arith.constant 0 : i32
    %c0_i32_1 = arith.constant 0 : i32
    return %c0_i32, %c0_i32_0 : i32, i32
  }
  func.func @transform_3(%arg0: i32) -> (i32, i32) {
    %c0_i32 = arith.constant 0 : i32
    %c0_i32_0 = arith.constant 0 : i32
    %c0_i32_1 = arith.constant 0 : i32
    return %c0_i32, %c0_i32_0 : i32, i32
  }
  func.func @transform_4(%arg0: i32) -> (i32, i32) {
    %c0_i32 = arith.constant 0 : i32
    %c0_i32_0 = arith.constant 0 : i32
    %c0_i32_1 = arith.constant 0 : i32
    return %c0_i32, %c0_i32_0 : i32, i32
  }
  func.func @transform_5(%arg0: i32) -> (i32, i32) {
    %c0_i32 = arith.constant 0 : i32
    %c0_i32_0 = arith.constant 0 : i32
    %c0_i32_1 = arith.constant 0 : i32
    return %c0_i32, %c0_i32_0 : i32, i32
  }
  func.func @transform_6(%arg0: i32) -> (i32, i32) {
    %c0_i32 = arith.constant 0 : i32
    %c0_i32_0 = arith.constant 0 : i32
    %c0_i32_1 = arith.constant 0 : i32
    return %c0_i32, %c0_i32_0 : i32, i32
  }
  func.func @transform_7(%arg0: i32) -> (i32, i32) {
    %c0_i32 = arith.constant 0 : i32
    %c0_i32_0 = arith.constant 0 : i32
    %c0_i32_1 = arith.constant 0 : i32
    return %c0_i32, %c0_i32_0 : i32, i32
  }
  func.func @transform_8(%arg0: i32) -> (i32, i32, i32) {
    %c0_i32 = arith.constant 0 : i32
    %c0_i32_0 = arith.constant 0 : i32
    %c0_i32_1 = arith.constant 0 : i32
    return %arg0, %c0_i32, %c0_i32_0 : i32, i32, i32
  }
}

</mosaic_0001>

<bundles_post_ra>
// kernel: pyramid_pooling.1
= control target key start
LH: loop header
LB: loop body
LE: loop exit
PB: predicated region body
PF: predicated region fallthrough
CT: control target
= control target key end

     0   :  { %s979_s27 = smov 0   ;;  %s1101_s0 = inlined_call_operand.vmem [shape: bf16[2,16,256], index: 0, kind: input, shape index: {}]   ;;  %s1102_s1 = inlined_call_operand.vmem [shape: bf16[256,56], index: 1, kind: input, shape index: {}]   ;;  %s1103_s2 = inlined_call_operand.vmem [shape: bf16[56,256], index: 2, kind: input, shape index: {}]   ;;  %s1104_s3 = inlined_call_operand.vmem [shape: bf16[16,16], index: 3, kind: input, shape index: {}]   ;;  %s1105_s4 = inlined_call_operand.vmem [shape: f32[16,56], index: 4, kind: input, shape index: {}]   ;;  %s1106_s5 = inlined_call_operand.vmem [shape: bf16[8,16], index: 5, kind: input, shape index: {}]   ;;  %s1107_s6 = inlined_call_operand.vmem [shape: bf16[8,16], index: 6, kind: input, shape index: {}]   ;;  %s1108_s7 = inlined_call_operand.vmem [shape: f32[8,1], index: 7, kind: input, shape index: {}]   ;;  %s1109_s8 = inlined_call_operand.vmem [shape: f32[2,8,256], index: 8, kind: output, shape index: {}]  }
   0x1 LB: > { %s797_s28 = sadd.s32 4294967295, %s929_s27   ;;  %p801_p0 = scmp.ge.s32.totalorder %s929_s27, 1  ;;  %s929_s27 = sphi %s979_s27, %s18_s27  }
   0x2   : > { %p262_p1 = scmp.lt.s32.totalorder %s929_s27, 3 }
   0x4   : > { %p263_p2 = pnand %p801_p0, %p262_p1 }
   0x5   : > { %v892_v0 = vld [vmem:[%s1102_s1 + $0x40] sm:$0xff] (!%p263_p2)   ;;  %v894_v2 = vld [vmem:[%s1102_s1 + $0x48] sm:$0xff] (!%p263_p2)   ;;  %p296_p3 = scmp.lt.s32.totalorder (!%p263_p2), %s797_s28, 1  ;;  %v896_v4 = vld [vmem:[%s1102_s1 + $0x50] sm:$0xff] (!%p263_p2)   ;;  %v931_v18 = vmov (!%p263_p2), 0.0   ;;  %vm932_vm0 = vmmov (!%p263_p2), 0  }
   0x6   : > { %266 = sbr.rel (%p263_p2) target bundleno = 925 (0x39d), region = 52  ;;  %v893_v1 = vld [vmem:[%s1102_s1] sm:$0xff] (!%p263_p2)   ;;  %842 = vmatprep.subr.bf16.mxu0 (!%p263_p2), %v892_v0  ;;  %v895_v3 = vld [vmem:[%s1102_s1 + $0x8] sm:$0xff] (!%p263_p2)   ;;  %v897_v5 = vld [vmem:[%s1102_s1 + $0x10] sm:$0xff] (!%p263_p2)   ;;  %868 = vmatprep.subr.bf16.mxu1 (!%p263_p2), %v931_v18  ;;  %vm498_vm1 = vcmask (!%p263_p2), 130048   ;;  %vm637_vm2 = vcmask (!%p263_p2), 1043456  }
   0x7   : > { %843 = vmatpush3.bf16.msra.mxu0 (!%p263_p2), %v893_v1  ;;  %v898_v6 = vld [vmem:[%s1102_s1 + $0x58] sm:$0xff] (!%p263_p2)   ;;  %v900_v8 = vld [vmem:[%s1102_s1 + $0x60] sm:$0xff] (!%p263_p2)   ;;  %v902_v10 = vld [vmem:[%s1102_s1 + $0x68] sm:$0xff] (!%p263_p2)   ;;  %870 = vmatprep.mubr.msk.bf16.mxu1 (!%p263_p2), %vm932_vm0, %v931_v18  ;;  %v933_v49 = vmov (!%p263_p2), 0   ;;  %vm633_vm3 = vcmask (!%p263_p2), 457728  }
   0x8   : > { %844 = vmatprep.subr.bf16.mxu0 (!%p263_p2), %v894_v2  ;;  %v899_v7 = vld [vmem:[%s1102_s1 + $0x18] sm:$0xff] (!%p263_p2)   ;;  %v901_v9 = vld [vmem:[%s1102_s1 + $0x20] sm:$0xff] (!%p263_p2)   ;;  %v903_v11 = vld [vmem:[%s1102_s1 + $0x28] sm:$0xff] (!%p263_p2)   ;;  %891 = vset.pattern.permute.xlu0 (!%p263_p2), %v933_v49 }
   0x9   : > { %v904_v13 = vld [vmem:[%s1102_s1 + $0x70] sm:$0xff] (!%p263_p2)   ;;  %v906_v15 = vld [vmem:[%s1102_s1 + $0x78] sm:$0xff] (!%p263_p2)   ;;  %v911_v26 = vld [vmem:[%s1104_s3] sm:$0xff] (!%p263_p2)  }
   0xa   : > { %v905_v14 = vld [vmem:[%s1102_s1 + $0x30] sm:$0xff] (!%p263_p2)   ;;  %v907_v16 = vld [vmem:[%s1102_s1 + $0x38] sm:$0xff] (!%p263_p2)   ;;  %v491_v27 = vld [vmem:[%s1105_s4] sm:$0xff] (!%p263_p2) }
   0xb   : > { %845 = vmatpush3.bf16.msra.mxu0 (!%p263_p2), %v895_v3  ;;  %v492_v29 = vld [vmem:[%s1105_s4 + $0x8] sm:$0xff] (!%p263_p2)  ;;  %v545_v39 = vld [vmem:[%s1107_s6] sm:$0xf] (!%p263_p2)  ;;  %v917_v41 = vld [vmem:[%s1103_s2 + $0x14] ss:$8 sps:$4 sm:$0xff] (!%p263_p2)  }
   0xc   : > { %846 = vmatprep.subr.bf16.mxu0 (!%p263_p2), %v896_v4  ;;  %v914_v37 = vld [vmem:[%s1103_s2 + $0x4] ss:$8 sps:$4 sm:$0xff] (!%p263_p2)   ;;  %v912_v40 = vld [vmem:[%s1103_s2] ss:$8 sps:$4 sm:$0xff] (!%p263_p2)   ;;  %v915_v42 = vld [vmem:[%s1103_s2 + $0x10] ss:$8 sps:$4 sm:$0xff] (!%p263_p2)  }
   0xd   : > { %s1111_s28 = smov (!%p296_p3, %s797_s28), 1  ;;  %v920_v43 = vld [vmem:[%s1103_s2 + $0x24] ss:$8 sps:$4 sm:$0xff]   ;;  %v597_v44 = vld [vmem:[%s1103_s2 + $0x30] sm:$0xff]  ;;  %v918_v45 = vld [vmem:[%s1103_s2 + $0x20] ss:$8 sps:$4 sm:$0xff]  }
   0xe   : > { %s840_s23 = sshll.u32 %s1111_s28, 4  ;;  %v834_v46 = vcombine.high %v597_v44, %v597_v44  ;;  %v833_v47 = vcombine.low %v597_v44, %v597_v44  ;;  %v730_v50 = vld [vmem:[%s1108_s7] sm:$0xff] }
   0xf   : > { %847 = vmatpush3.bf16.msra.mxu0 %v897_v5  ;;  %s300_s30 = scalar_lea.vmem %s1101_s0, %s840_s23  ;;  %733 = vperm.xlu0 %891, %v730_v50   ;;  %v685_v56 = vld [vmem:[%s1106_s5] sm:$0xf]  ;;  %s305_s13 = scalar_lea.vmem %s1109_s8, %s840_s23 }
  0x10   : > { %848 = vmatprep.subr.bf16.mxu0 %v898_v6  ;;  %v1031_v12 = vld [vmem:[%s300_s30 + $0x4] ss:$8 sps:$4 sm:$0xff]   ;;  %v1046_v17 = vld [vmem:[%s300_s30] ss:$8 sps:$4 sm:$0xff]   ;;  %v639_v48 = vsel %vm637_vm2, %v833_v47, 0 }
  0x11   : > { %479 = vmatprep.mubr.bf16.mxu0 %v1031_v12 }
  0x13   : > { %849 = vmatpush3.bf16.msra.mxu0 %v899_v7 }
  0x14   : > { %850 = vmatprep.subr.bf16.mxu0 %v900_v8 }
  0x17   : > { %851 = vmatpush3.bf16.msra.mxu0 %v901_v9 }
  0x18   : > { %852 = vmatprep.subr.bf16.mxu0 %v902_v10 }
  0x1b   : > { %853 = vmatpush3.bf16.msra.mxu0 %v903_v11 }
  0x1c   : > { %854 = vmatprep.subr.bf16.mxu0 %v904_v13 }
  0x1f   : > { %855 = vmatpush3.bf16.msra.mxu0 %v905_v14 }
  0x20   : > { %856 = vmatprep.subr.bf16.mxu0 %v906_v15 }
  0x23   : > { %857 = vmatpush3.bf16.msra.mxu0 %v907_v16 }
  0x26   : > { %480 = vmatmul.mubr.bf16.vlgmr.msra.gmra.mrb[0].mxu0 %v1046_v17 }
  0x8e   : > { %v734_v62 = vpop.permute.xlu0 %733 }
  0xf9   : > { %v858_v19 = vpop.f32.mrb[0].mxu0 }
  0xfa   : > { %v859_v20 = vpop.f32.mrb[1].mxu0 }
  0xfb   : > { %v860_v21 = vadd.f32 %v859_v20, %v858_v19  ;;  %v861_v22 = vpop.f32.mrb[2].mxu0 }
  0xfc   : > { %v862_v23 = vpop.f32.mrb[3].mxu0 }
  0xfd   : > { %v863_v24 = vadd.f32 %v862_v23, %v861_v22 }
  0xff   : > { %v490_v25 = vpack.c.bf16 %v863_v24, %v860_v21 }
 0x101   : > { %869 = vmatpush3.bf16.msra.mxu1 %v490_v25 }
 0x102   : > { %874 = vmatprep.subr.bf16.mxu1 %v931_v18 }
 0x104   : > { %871 = vmatmul.mubr.msk.bf16.vlgmr.msra.gmra.mrb[0].mxu1 %vm498_vm1, %v911_v26 }
 0x105   : > { %876 = vmatprep.mubr.msk.bf16.mxu1 %vm932_vm0, %v931_v18 }
 0x1d7   : > { %v536_v28 = vpop.f32.mrb[0].mxu1 }
 0x1d8   : > { %v537_v30 = vadd.f32 %v536_v28, %v491_v27  ;;  %v872_v31 = vpop.f32.mrb[1].mxu1 }
 0x1d9   : > { %v539_v32 = vpop.f32.mrb[2].mxu1 }
 0x1da   : > { %v540_v33 = vadd.f32 %v539_v32, %v492_v29  ;;  %v873_v34 = vpop.f32.mrb[3].mxu1  ;;  %v543_v35 = vmax.f32 %v537_v30, 0.0 }
 0x1dc   : > { %v544_v36 = vmax.f32 %v540_v33, 0.0 }
 0x1de   : > { %v546_v38 = vpack.c.bf16 %v544_v36, %v543_v35 }
 0x1e0   : > { %875 = vmatpush3.bf16.msra.mxu1 %v546_v38 }
 0x1e1   : > { %644 = vmatprep.subr.bf16.mxu1 %v914_v37 }
 0x1e3   : > { %877 = vmatmul.mubr.msk.bf16.vlgmr.msra.gmra.mrb[4].mxu1 %vm498_vm1, %v545_v39 }
 0x1e4   : > { %645 = vmatpush1.bf16.msra.mxu1 %v912_v40  ;;  %676 = vmatprep.mubr.bf16.mxu1 %v933_v49 }
 0x1e5   : > { %646 = vmatprep.subr.bf16.mxu1 %v917_v41 }
 0x1e8   : > { %647 = vmatpush1.bf16.msra.mxu1 %v915_v42 }
 0x1e9   : > { %648 = vmatprep.subr.bf16.mxu1 %v920_v43 }
 0x1ec   : > { %649 = vmatpush1.bf16.msra.mxu1 %v918_v45 }
 0x1ed   : > { %835 = vmatprep.subr.msk.bf16.mxu1 %vm637_vm2, %v834_v46 }
 0x1f0   : > { %651 = vmatpush1.bf16.msra.mxu1 %v639_v48 }
 0x1f1   : > { %689 = vmatprep.subr.bf16.mxu1 %v1031_v12 }
 0x2b6   : > { %v584_v51 = vpop.f32.mrb[4].mxu1 }
 0x2b7   : > { %v590_v52 = vpack.c.bf16 %v584_v51, %v584_v51  ;;  %v878_v53 = vpop.f32.mrb[5].mxu1 }
 0x2b8   : > { %v587_v54 = vpop.f32.mrb[6].mxu1 }
 0x2b9   : > { %836 = vmatmul.mubr.msk.bf16.vlgmr.msra.gmra.mrb[8].mxu1 %vm633_vm3, %v590_v52  ;;  %v879_v55 = vpop.f32.mrb[7].mxu1 }
 0x2ba   : > { %690 = vmatpush1.bf16.msra.mxu1 %v1046_v17  ;;  %721 = vmatprep.mubr.bf16.mxu1 %v933_v49 }
 0x2c1   : > { %837 = vmatmul.mubr.msk.bf16.vlgmr.msra.gmra.mrb[12].mxu1 %vm498_vm1, %v685_v56 }
 0x38c   : > { %v678_v57 = vpop.f32.mrb[8].mxu1 }
 0x38d   : > { %v680_v58 = vpop.f32.mrb[9].mxu1 }
 0x38e   : > { %v682_v59 = vpop.f32.mrb[10].mxu1 }
 0x38f   : > { %v683_v60 = vpop.f32.mrb[11].mxu1 }
 0x394   : > { %v723_v61 = vpop.f32.mrb[12].mxu1 }
 0x395   : > { %v724_v63 = vadd.f32 %v723_v61, %v678_v57  ;;  %v725_v0 = vpop.f32.mrb[13].mxu1 }
 0x396   : > { %v726_v1 = vadd.f32 %v725_v0, %v680_v58  ;;  %v727_v2 = vpop.f32.mrb[14].mxu1 }
 0x397   : > { %v736_v3 = vadd.f32 %v734_v62, %v724_v63  ;;  %v728_v4 = vpop.f32.mrb[15].mxu1 }
 0x398   : > { %v737_v5 = vadd.f32 %v734_v62, %v726_v1 }
 0x399   : > { %v738_v6 = vmax.f32 %v736_v3, 0.0 }
 0x39a   : > { %v739_v7 = vmax.f32 %v737_v5, 0.0 }
 0x39b   : > { %740 = vst [vmem:[%s305_s13] sm:$0xff] %v738_v6 }
 0x39c   : > { %741 = vst [vmem:[%s305_s13 + $0x8] sm:$0xff] %v739_v7 }
 0x39d PF: > { %s18_s27 = sadd.s32 1, %s929_s27  }
 0x39e   : > { %p15_p4 = scmp.ge.s32.totalorder %s18_s27, 4  }
 0x3a0   :  { %17 = sbr.rel (!%p15_p4) target bundleno = 1 (0x1), region = 82 }

</bundles_post_ra>
